<compile_context>
chip_gen: v5e
topology: v5e:2x2
jax: 0.10.0
libtpu: 0.0.40
codegen_flags: <defaults>
</compile_context>

<pallas_src>
import math
import functools

import numpy as np
import jax
import jax.numpy as jnp
from jax import lax
from jax.experimental import pallas as pl
from jax.experimental.pallas import tpu as pltpu


def _cross_attention_kernel(
    x_ref, y_ref,
    wq_ref, bq_ref,
    wk_ref, bk_ref,
    wv_ref, bv_ref,
    wo_ref, bo_ref,
    o_ref,
    acc_ref, kc_ref, vc_ref,
    *, hg: int, dh: int, compute_dtype,
):
    """One grid step = (one batch, one q-tile, one group of hg heads)."""
    i = pl.program_id(1)   # q-tile index
    g = pl.program_id(2)   # head-group index

    @pl.when(g == 0)
    def _init_acc():
        acc_ref[...] = jnp.zeros_like(acc_ref)

    # --- K/V projections: only on the first q-tile of each batch, cached -----
    @pl.when(i == 0)
    def _project_kv():
        y = y_ref[...]                                                # (Sk, D)
        k = jnp.dot(y, wk_ref[g], preferred_element_type=jnp.float32) + bk_ref[g]
        v = jnp.dot(y, wv_ref[g], preferred_element_type=jnp.float32)  # bv folded later
        kc_ref[g] = k.astype(compute_dtype)
        vc_ref[g] = v.astype(compute_dtype)

    # --- grouped Q projection (softmax scale pre-folded into wq / bq) --------
    q = (jnp.dot(x_ref[...], wq_ref[g], preferred_element_type=jnp.float32)
         + bq_ref[g]).astype(compute_dtype)                          # (tq, hg*dh)
    k = kc_ref[g]                                                    # (Sk, hg*dh)
    v = vc_ref[g]                                                    # (Sk, hg*dh)

    outs = []
    for h in range(hg):                                              # static, small
        lo, hi = h * dh, (h + 1) * dh
        q_h, k_h, v_h = q[:, lo:hi], k[:, lo:hi], v[:, lo:hi]
        # scores: contract the last (dh) dims -> no explicit transpose emitted.
        s = lax.dot_general(q_h, k_h, (((1,), (1,)), ((), ())),
                            preferred_element_type=jnp.float32)      # (tq, Sk)
        m = jnp.max(s, axis=-1, keepdims=True)
        p = jnp.exp(s - m)                                           # unnormalized
        denom = jnp.sum(p, axis=-1, keepdims=True)
        o_h = jnp.dot(p.astype(compute_dtype), v_h,
                      preferred_element_type=jnp.float32)            # (tq, dh) f32
        # normalize the small (tq, dh) output instead of the (tq, Sk) probs.
        outs.append(o_h * pl.reciprocal(denom, approx=True))

    o_grp = outs[0] if hg == 1 else jnp.concatenate(outs, axis=-1)   # (tq, hg*dh)
    o_grp = o_grp + bv_ref[g]   # folded v-proj bias (softmax rows sum to 1)

    # fused output projection: accumulate this group's slice of `attn @ Wo.T`.
    acc_ref[...] += jnp.dot(o_grp.astype(compute_dtype), wo_ref[g],
                            preferred_element_type=jnp.float32)      # (tq, D)

    @pl.when(g == pl.num_programs(2) - 1)
    def _finalize():
        o_ref[...] = (acc_ref[...] + bo_ref[...]).astype(o_ref.dtype)


def cross_attention_pallas(x, y, params, n_heads: int, *,
                           compute_dtype=jnp.bfloat16, tq=None, mxu_width=256):
    """x: (B, Sq, D_emb), y: (B, Sk, D_cross == D_emb). Returns (B, Sq, D_emb)."""
    B, Sq, D = x.shape
    _, Sk, Dc = y.shape
    assert Dc == D, "module is only shape-consistent when d_cross == d_embedding"
    assert D % n_heads == 0
    H, dh = n_heads, D // n_heads

    # head grouping: hg heads per grid step so projection/out-proj matmuls have
    # N = K = hg*dh (use mxu_width=128 on v5e).
    hg = max(1, min(H, mxu_width // max(dh, 1)))
    while H % hg:
        hg -= 1
    G = H // hg
    hgdh = hg * dh

    # q-tile: prefer large tiles (amortizes per-step overhead, better MXU fill).
    if tq is None:
        tq = Sq
        for cand in (512, 256, 128):
            if Sq % cand == 0:
                tq = cand
                break
    assert Sq % tq == 0
    nq = Sq // tq

    scale = 1.0 / math.sqrt(dh)

    # ---- host-side weight prep (PyTorch (out,in) -> grouped (G, in, hg*dh)) --
    def group_in(w):                       # heads are head-major in the out dim
        return jnp.transpose(jnp.transpose(w).reshape(D, G, hgdh), (1, 0, 2))

    wq = (group_in(params["wq"]) * scale).astype(compute_dtype)      # scale folded
    wk = group_in(params["wk"]).astype(compute_dtype)
    wv = group_in(params["wv"]).astype(compute_dtype)
    wo = jnp.transpose(params["wo"]).reshape(G, hgdh, D).astype(compute_dtype)

    bq = (params["bq"] * scale).reshape(G, 1, hgdh).astype(jnp.float32)
    bk = params["bk"].reshape(G, 1, hgdh).astype(jnp.float32)
    bv = params["bv"].reshape(G, 1, hgdh).astype(jnp.float32)
    bo = params["bo"].reshape(1, D).astype(jnp.float32)

    xc = x.astype(compute_dtype)
    yc = y.astype(compute_dtype)

    kernel = functools.partial(_cross_attention_kernel, hg=hg, dh=dh,
                               compute_dtype=compute_dtype)

    # VMEM-resident arrays: full-array block, constant index_map -> one DMA.
    def resident(arr):
        if arr.ndim == 3:
            return pl.BlockSpec(arr.shape, lambda b, i, g: (0, 0, 0))
        return pl.BlockSpec(arr.shape, lambda b, i, g: (0, 0))

    # rough VMEM footprint (lane-padded) -> scoped-VMEM limit with headroom.
    cbytes = np.dtype(compute_dtype).itemsize
    obytes = np.dtype(x.dtype).itemsize
    lane = lambda n: max(n, 128)
    vmem_needed = (
        4 * G * D * lane(hgdh) * cbytes              # resident wq/wk/wv/wo
        + 2 * Sk * D * cbytes                        # y (double-buffered)
        + 2 * tq * D * cbytes + 2 * tq * D * obytes  # x / out tiles
        + 2 * G * Sk * lane(hgdh) * cbytes           # K/V cache
        + tq * D * 4                                 # f32 accumulator
    )
    vmem_limit = int(min(64 * 2 ** 20, max(16 * 2 ** 20, 2 * vmem_needed)))

    cost = pl.CostEstimate(
        flops=int(2 * B * Sq * D * D          # q projection
                  + 4 * B * Sk * D * D        # k + v projections (once per batch)
                  + 4 * B * Sq * Sk * D       # scores + p@v
                  + 2 * B * Sq * D * D),      # fused out projection
        transcendentals=int(B * H * Sq * Sk),
        bytes_accessed=int((xc.size + yc.size + 4 * D * D) * cbytes
                           + B * Sq * D * obytes),
    )

    return pl.pallas_call(
        kernel,
        out_shape=jax.ShapeDtypeStruct((B, Sq, D), x.dtype),
        grid_spec=pltpu.PrefetchScalarGridSpec(
            num_scalar_prefetch=0,
            grid=(B, nq, G),
            in_specs=[
                pl.BlockSpec((None, tq, D), lambda b, i, g: (b, i, 0)),   # x tile
                pl.BlockSpec((None, Sk, D), lambda b, i, g: (b, 0, 0)),   # y (per batch)
                resident(wq), resident(bq),
                resident(wk), resident(bk),
                resident(wv), resident(bv),
                resident(wo), resident(bo),
            ],
            out_specs=pl.BlockSpec((None, tq, D), lambda b, i, g: (b, i, 0)),
            scratch_shapes=[
                pltpu.VMEM((tq, D), jnp.float32),            # out-proj f32 accumulator
                pltpu.VMEM((G, Sk, hgdh), compute_dtype),    # cached K (per head group)
                pltpu.VMEM((G, Sk, hgdh), compute_dtype),    # cached V (per head group)
            ],
        ),
        compiler_params=pltpu.CompilerParams(
            # q-tile axis must stay sequential (K/V cache is filled at i == 0);
            # batch is the megacore-parallel axis (B >= 2 feeds both v7x TCs).
            dimension_semantics=("parallel", "arbitrary", "arbitrary"),
            vmem_limit_bytes=vmem_limit,
        ),
        cost_estimate=cost,
    )(xc, yc, wq, bq, wk, bk, wv, bv, wo, bo)


def cross_attention_ref(x, y, params, n_heads: int):
    """Pure-JAX reference mirroring the (intended) PyTorch forward, in f32."""
    B, Sq, D = x.shape
    dh = D // n_heads
    q = x @ params["wq"].T + params["bq"]
    k = y @ params["wk"].T + params["bk"]
    v = y @ params["wv"].T + params["bv"]

    def split(t):
        return t.reshape(B, -1, n_heads, dh).transpose(0, 2, 1, 3)

    qh, kh, vh = split(q), split(k), split(v)
    w = (qh @ kh.transpose(0, 1, 3, 2)) / math.sqrt(dh)
    w = jax.nn.softmax(w, axis=-1)
    o = (w @ vh).transpose(0, 2, 1, 3).reshape(x.shape)
    return o @ params["wo"].T + params["bo"]


def init_params(key, d_embedding, d_cross):
    """Deterministic PyTorch-Linear-shaped params (weight: (out, in))."""
    ks = jax.random.split(key, 8)

    def linear(kw, kb, out_f, in_f):
        bound = 1.0 / math.sqrt(in_f)
        w = jax.random.uniform(kw, (out_f, in_f), jnp.float32, -bound, bound)
        b = jax.random.uniform(kb, (out_f,), jnp.float32, -bound, bound)
        return w, b

    wq, bq = linear(ks[0], ks[1], d_cross, d_embedding)       # q_proj
    wk, bk = linear(ks[2], ks[3], d_embedding, d_cross)       # k_proj
    wv, bv = linear(ks[4], ks[5], d_embedding, d_cross)       # v_proj
    wo, bo = linear(ks[6], ks[7], d_embedding, d_embedding)   # out_proj
    return dict(wq=wq, bq=bq, wk=wk, bk=bk, wv=wv, bv=bv, wo=wo, bo=bo)


if __name__ == "__main__":
    # small, forward-consistent shapes: d_cross == d_embedding (see NOTE above)
    B, Sq, Sk = 2, 8, 8
    n_heads, d_embedding, d_cross = 4, 32, 32

    key = jax.random.PRNGKey(0)
    kx, ky, kp = jax.random.split(key, 3)
    x = jax.random.normal(kx, (B, Sq, d_embedding), jnp.float32)
    y = jax.random.normal(ky, (B, Sk, d_cross), jnp.float32)
    params = init_params(kp, d_embedding, d_cross)

    ref = cross_attention_ref(x, y, params, n_heads)

    # f32 compute path (test-only; softmax uses approx reciprocal -> loose tol)
    out_f32 = jax.block_until_ready(
        cross_attention_pallas(x, y, params, n_heads, compute_dtype=jnp.float32))
    assert out_f32.shape == (B, Sq, d_embedding)
    assert jnp.allclose(out_f32, ref, atol=1e-2, rtol=1e-2), "f32 kernel mismatch"

    # default bf16-MXU path (f32 accumulation) -- the production path
    out_bf16 = jax.block_until_ready(cross_attention_pallas(x, y, params, n_heads))
    assert out_bf16.shape == (B, Sq, d_embedding)
    assert jnp.allclose(out_bf16, ref, atol=5e-2, rtol=5e-2), "bf16 kernel mismatch"

    print("KERNEL_OK")
</pallas_src>

<mosaic_0001>
module attributes {stable_mosaic.version = 11 : i64} {
  func.func @_cross_attention_kernel(%arg0: i32, %arg1: i32, %arg2: i32, %arg3: memref<1x8x32xf32, #tpu.memory_space<vmem>>, %arg4: memref<1x8x32xf32, #tpu.memory_space<vmem>>, %arg5: memref<1x32x32xf32, #tpu.memory_space<vmem>>, %arg6: memref<1x1x32xf32, #tpu.memory_space<vmem>>, %arg7: memref<1x32x32xf32, #tpu.memory_space<vmem>>, %arg8: memref<1x1x32xf32, #tpu.memory_space<vmem>>, %arg9: memref<1x32x32xf32, #tpu.memory_space<vmem>>, %arg10: memref<1x1x32xf32, #tpu.memory_space<vmem>>, %arg11: memref<1x32x32xf32, #tpu.memory_space<vmem>>, %arg12: memref<1x32xf32, #tpu.memory_space<vmem>>, %arg13: memref<1x8x32xf32, #tpu.memory_space<vmem>>, %arg14: memref<8x32xf32, #tpu.memory_space<vmem>>, %arg15: memref<1x8x32xf32, #tpu.memory_space<vmem>>, %arg16: memref<1x8x32xf32, #tpu.memory_space<vmem>>) attributes {dimension_semantics = [#tpu.dimension_semantics<parallel>, #tpu.dimension_semantics<arbitrary>, #tpu.dimension_semantics<arbitrary>], iteration_bounds = array<i64: 2, 1, 1>, scalar_prefetch = 0 : i64, scratch_operands = 3 : i64, tpu.core_type = #tpu.core_type<tc>, window_params = [{transform_indices = @transform_0, window_bounds = array<i64: 1, 8, 32>}, {transform_indices = @transform_1, window_bounds = array<i64: 1, 8, 32>}, {pipeline_mode = #tpu.pipeline_mode<synchronous>, transform_indices = @transform_2, window_bounds = array<i64: 1, 32, 32>}, {pipeline_mode = #tpu.pipeline_mode<synchronous>, transform_indices = @transform_3, window_bounds = array<i64: 1, 1, 32>}, {pipeline_mode = #tpu.pipeline_mode<synchronous>, transform_indices = @transform_4, window_bounds = array<i64: 1, 32, 32>}, {pipeline_mode = #tpu.pipeline_mode<synchronous>, transform_indices = @transform_5, window_bounds = array<i64: 1, 1, 32>}, {pipeline_mode = #tpu.pipeline_mode<synchronous>, transform_indices = @transform_6, window_bounds = array<i64: 1, 32, 32>}, {pipeline_mode = #tpu.pipeline_mode<synchronous>, transform_indices = @transform_7, window_bounds = array<i64: 1, 1, 32>}, {pipeline_mode = #tpu.pipeline_mode<synchronous>, transform_indices = @transform_8, window_bounds = array<i64: 1, 32, 32>}, {pipeline_mode = #tpu.pipeline_mode<synchronous>, transform_indices = @transform_9, window_bounds = array<i64: 1, 32>}, {transform_indices = @transform_10, window_bounds = array<i64: 1, 8, 32>}]} {
    %c0_i32 = arith.constant 0 : i32
    %0 = arith.cmpi eq, %arg2, %c0_i32 : i32
    %1 = arith.extui %0 : i1 to i32
    %c0_i32_0 = arith.constant 0 : i32
    %2 = arith.cmpi ne, %1, %c0_i32_0 : i32
    scf.if %2 {
      %cst_40 = arith.constant 0.000000e+00 : f32
      %99 = vector.broadcast %cst_40 : f32 to vector<8x32xf32>
      %c0_41 = arith.constant 0 : index
      %c0_42 = arith.constant 0 : index
      %100 = vector.load %arg14[%c0_41, %c0_42] : memref<8x32xf32, #tpu.memory_space<vmem>>, vector<8x32xf32>
      tpu.vector_store %arg14[%c0_41, %c0_42], %99 {strides = array<i32>} : memref<8x32xf32, #tpu.memory_space<vmem>>, vector<8x32xf32>,
    } else {
    }
    %c0_i32_1 = arith.constant 0 : i32
    %3 = arith.cmpi eq, %arg1, %c0_i32_1 : i32
    %4 = arith.extui %3 : i1 to i32
    %c0_i32_2 = arith.constant 0 : i32
    %5 = arith.cmpi ne, %4, %c0_i32_2 : i32
    scf.if %5 {
      %c0_40 = arith.constant 0 : index
      %c0_41 = arith.constant 0 : index
      %c0_42 = arith.constant 0 : index
      %99 = vector.load %arg4[%c0_40, %c0_41, %c0_42] : memref<1x8x32xf32, #tpu.memory_space<vmem>>, vector<1x8x32xf32>
      %100 = vector.shape_cast %99 : vector<1x8x32xf32> to vector<8x32xf32>
      %101 = arith.index_cast %arg2 : i32 to index
      %c0_43 = arith.constant 0 : index
      %c0_44 = arith.constant 0 : index
      %102 = vector.load %arg7[%101, %c0_43, %c0_44] : memref<1x32x32xf32, #tpu.memory_space<vmem>>, vector<1x32x32xf32>
      %103 = vector.shape_cast %102 : vector<1x32x32xf32> to vector<32x32xf32>
      %cst_45 = arith.constant dense<0.000000e+00> : vector<8x32xf32>
      %104 = tpu.matmul %100, %103, %cst_45 {dimension_numbers = #tpu.dot_dimension_numbers<[1], [0], [0], [1], [0, 0, 1, 1], [], []>} : vector<8x32xf32>, vector<32x32xf32>, vector<8x32xf32> -> vector<8x32xf32>
      %105 = arith.index_cast %arg2 : i32 to index
      %c0_46 = arith.constant 0 : index
      %c0_47 = arith.constant 0 : index
      %106 = vector.load %arg8[%105, %c0_46, %c0_47] : memref<1x1x32xf32, #tpu.memory_space<vmem>>, vector<1x1x32xf32>
      %107 = vector.shape_cast %106 : vector<1x1x32xf32> to vector<1x32xf32>
      %108 = vector.broadcast %107 : vector<1x32xf32> to vector<8x32xf32>
      %109 = arith.addf %104, %108 : vector<8x32xf32>
      %110 = arith.index_cast %arg2 : i32 to index
      %c0_48 = arith.constant 0 : index
      %c0_49 = arith.constant 0 : index
      %111 = vector.load %arg9[%110, %c0_48, %c0_49] : memref<1x32x32xf32, #tpu.memory_space<vmem>>, vector<1x32x32xf32>
      %112 = vector.shape_cast %111 : vector<1x32x32xf32> to vector<32x32xf32>
      %cst_50 = arith.constant dense<0.000000e+00> : vector<8x32xf32>
      %113 = tpu.matmul %100, %112, %cst_50 {dimension_numbers = #tpu.dot_dimension_numbers<[1], [0], [0], [1], [0, 0, 1, 1], [], []>} : vector<8x32xf32>, vector<32x32xf32>, vector<8x32xf32> -> vector<8x32xf32>
      %114 = arith.index_cast %arg2 : i32 to index
      %c0_51 = arith.constant 0 : index
      %c0_52 = arith.constant 0 : index
      %115 = vector.load %arg15[%114, %c0_51, %c0_52] : memref<1x8x32xf32, #tpu.memory_space<vmem>>, vector<1x8x32xf32>
      %116 = vector.shape_cast %115 : vector<1x8x32xf32> to vector<8x32xf32>
      %117 = vector.shape_cast %109 : vector<8x32xf32> to vector<1x8x32xf32>
      tpu.vector_store %arg15[%114, %c0_51, %c0_52], %117 {strides = array<i32>} : memref<1x8x32xf32, #tpu.memory_space<vmem>>, vector<1x8x32xf32>,
      %118 = arith.index_cast %arg2 : i32 to index
      %c0_53 = arith.constant 0 : index
      %c0_54 = arith.constant 0 : index
      %119 = vector.load %arg16[%118, %c0_53, %c0_54] : memref<1x8x32xf32, #tpu.memory_space<vmem>>, vector<1x8x32xf32>
      %120 = vector.shape_cast %119 : vector<1x8x32xf32> to vector<8x32xf32>
      %121 = vector.shape_cast %113 : vector<8x32xf32> to vector<1x8x32xf32>
      tpu.vector_store %arg16[%118, %c0_53, %c0_54], %121 {strides = array<i32>} : memref<1x8x32xf32, #tpu.memory_space<vmem>>, vector<1x8x32xf32>,
    } else {
    }
    %c0 = arith.constant 0 : index
    %c0_3 = arith.constant 0 : index
    %c0_4 = arith.constant 0 : index
    %6 = vector.load %arg3[%c0, %c0_3, %c0_4] : memref<1x8x32xf32, #tpu.memory_space<vmem>>, vector<1x8x32xf32>
    %7 = vector.shape_cast %6 : vector<1x8x32xf32> to vector<8x32xf32>
    %8 = arith.index_cast %arg2 : i32 to index
    %c0_5 = arith.constant 0 : index
    %c0_6 = arith.constant 0 : index
    %9 = vector.load %arg5[%8, %c0_5, %c0_6] : memref<1x32x32xf32, #tpu.memory_space<vmem>>, vector<1x32x32xf32>
    %10 = vector.shape_cast %9 : vector<1x32x32xf32> to vector<32x32xf32>
    %cst = arith.constant dense<0.000000e+00> : vector<8x32xf32>
    %11 = tpu.matmul %7, %10, %cst {dimension_numbers = #tpu.dot_dimension_numbers<[1], [0], [0], [1], [0, 0, 1, 1], [], []>} : vector<8x32xf32>, vector<32x32xf32>, vector<8x32xf32> -> vector<8x32xf32>
    %12 = arith.index_cast %arg2 : i32 to index
    %c0_7 = arith.constant 0 : index
    %c0_8 = arith.constant 0 : index
    %13 = vector.load %arg6[%12, %c0_7, %c0_8] : memref<1x1x32xf32, #tpu.memory_space<vmem>>, vector<1x1x32xf32>
    %14 = vector.shape_cast %13 : vector<1x1x32xf32> to vector<1x32xf32>
    %15 = vector.broadcast %14 : vector<1x32xf32> to vector<8x32xf32>
    %16 = arith.addf %11, %15 : vector<8x32xf32>
    %17 = arith.index_cast %arg2 : i32 to index
    %c0_9 = arith.constant 0 : index
    %c0_10 = arith.constant 0 : index
    %18 = vector.load %arg15[%17, %c0_9, %c0_10] : memref<1x8x32xf32, #tpu.memory_space<vmem>>, vector<1x8x32xf32>
    %19 = vector.shape_cast %18 : vector<1x8x32xf32> to vector<8x32xf32>
    %20 = arith.index_cast %arg2 : i32 to index
    %c0_11 = arith.constant 0 : index
    %c0_12 = arith.constant 0 : index
    %21 = vector.load %arg16[%20, %c0_11, %c0_12] : memref<1x8x32xf32, #tpu.memory_space<vmem>>, vector<1x8x32xf32>
    %22 = vector.shape_cast %21 : vector<1x8x32xf32> to vector<8x32xf32>
    %23 = vector.extract_strided_slice %16 {offsets = [0, 0], sizes = [8, 8], strides = [1, 1]} : vector<8x32xf32> to vector<8x8xf32>
    %24 = vector.extract_strided_slice %19 {offsets = [0, 0], sizes = [8, 8], strides = [1, 1]} : vector<8x32xf32> to vector<8x8xf32>
    %25 = vector.extract_strided_slice %22 {offsets = [0, 0], sizes = [8, 8], strides = [1, 1]} : vector<8x32xf32> to vector<8x8xf32>
    %cst_13 = arith.constant dense<0.000000e+00> : vector<8x8xf32>
    %26 = tpu.matmul %23, %24, %cst_13 {dimension_numbers = #tpu.dot_dimension_numbers<[1], [1], [0], [0], [0, 0, 1, 0], [], []>} : vector<8x8xf32>, vector<8x8xf32>, vector<8x8xf32> -> vector<8x8xf32>
    %cst_14 = arith.constant dense<0xFF800000> : vector<8xf32>
    %27 = vector.multi_reduction <maximumf>, %26, %cst_14 [1] : vector<8x8xf32> to vector<8xf32>
    %28 = vector.shape_cast %27 : vector<8xf32> to vector<8x1xf32>
    %29 = vector.broadcast %28 : vector<8x1xf32> to vector<8x8xf32>
    %30 = arith.subf %26, %29 : vector<8x8xf32>
    %31 = math.exp %30 : vector<8x8xf32>
    %cst_15 = arith.constant dense<0.000000e+00> : vector<8xf32>
    %32 = vector.multi_reduction <add>, %31, %cst_15 [1] : vector<8x8xf32> to vector<8xf32>
    %33 = vector.shape_cast %32 : vector<8xf32> to vector<8x1xf32>
    %cst_16 = arith.constant dense<0.000000e+00> : vector<8x8xf32>
    %34 = tpu.matmul %31, %25, %cst_16 {dimension_numbers = #tpu.dot_dimension_numbers<[1], [0], [0], [1], [0, 0, 1, 1], [], []>} : vector<8x8xf32>, vector<8x8xf32>, vector<8x8xf32> -> vector<8x8xf32>
    %35 = tpu.reciprocal %33 {approx = true} : vector<8x1xf32> -> vector<8x1xf32>
    %36 = vector.broadcast %35 : vector<8x1xf32> to vector<8x8xf32>
    %37 = arith.mulf %34, %36 : vector<8x8xf32>
    %38 = vector.extract_strided_slice %16 {offsets = [0, 8], sizes = [8, 8], strides = [1, 1]} : vector<8x32xf32> to vector<8x8xf32>
    %39 = vector.extract_strided_slice %19 {offsets = [0, 8], sizes = [8, 8], strides = [1, 1]} : vector<8x32xf32> to vector<8x8xf32>
    %40 = vector.extract_strided_slice %22 {offsets = [0, 8], sizes = [8, 8], strides = [1, 1]} : vector<8x32xf32> to vector<8x8xf32>
    %cst_17 = arith.constant dense<0.000000e+00> : vector<8x8xf32>
    %41 = tpu.matmul %38, %39, %cst_17 {dimension_numbers = #tpu.dot_dimension_numbers<[1], [1], [0], [0], [0, 0, 1, 0], [], []>} : vector<8x8xf32>, vector<8x8xf32>, vector<8x8xf32> -> vector<8x8xf32>
    %cst_18 = arith.constant dense<0xFF800000> : vector<8xf32>
    %42 = vector.multi_reduction <maximumf>, %41, %cst_18 [1] : vector<8x8xf32> to vector<8xf32>
    %43 = vector.shape_cast %42 : vector<8xf32> to vector<8x1xf32>
    %44 = vector.broadcast %43 : vector<8x1xf32> to vector<8x8xf32>
    %45 = arith.subf %41, %44 : vector<8x8xf32>
    %46 = math.exp %45 : vector<8x8xf32>
    %cst_19 = arith.constant dense<0.000000e+00> : vector<8xf32>
    %47 = vector.multi_reduction <add>, %46, %cst_19 [1] : vector<8x8xf32> to vector<8xf32>
    %48 = vector.shape_cast %47 : vector<8xf32> to vector<8x1xf32>
    %cst_20 = arith.constant dense<0.000000e+00> : vector<8x8xf32>
    %49 = tpu.matmul %46, %40, %cst_20 {dimension_numbers = #tpu.dot_dimension_numbers<[1], [0], [0], [1], [0, 0, 1, 1], [], []>} : vector<8x8xf32>, vector<8x8xf32>, vector<8x8xf32> -> vector<8x8xf32>
    %50 = tpu.reciprocal %48 {approx = true} : vector<8x1xf32> -> vector<8x1xf32>
    %51 = vector.broadcast %50 : vector<8x1xf32> to vector<8x8xf32>
    %52 = arith.mulf %49, %51 : vector<8x8xf32>
    %53 = vector.extract_strided_slice %16 {offsets = [0, 16], sizes = [8, 8], strides = [1, 1]} : vector<8x32xf32> to vector<8x8xf32>
    %54 = vector.extract_strided_slice %19 {offsets = [0, 16], sizes = [8, 8], strides = [1, 1]} : vector<8x32xf32> to vector<8x8xf32>
    %55 = vector.extract_strided_slice %22 {offsets = [0, 16], sizes = [8, 8], strides = [1, 1]} : vector<8x32xf32> to vector<8x8xf32>
    %cst_21 = arith.constant dense<0.000000e+00> : vector<8x8xf32>
    %56 = tpu.matmul %53, %54, %cst_21 {dimension_numbers = #tpu.dot_dimension_numbers<[1], [1], [0], [0], [0, 0, 1, 0], [], []>} : vector<8x8xf32>, vector<8x8xf32>, vector<8x8xf32> -> vector<8x8xf32>
    %cst_22 = arith.constant dense<0xFF800000> : vector<8xf32>
    %57 = vector.multi_reduction <maximumf>, %56, %cst_22 [1] : vector<8x8xf32> to vector<8xf32>
    %58 = vector.shape_cast %57 : vector<8xf32> to vector<8x1xf32>
    %59 = vector.broadcast %58 : vector<8x1xf32> to vector<8x8xf32>
    %60 = arith.subf %56, %59 : vector<8x8xf32>
    %61 = math.exp %60 : vector<8x8xf32>
    %cst_23 = arith.constant dense<0.000000e+00> : vector<8xf32>
    %62 = vector.multi_reduction <add>, %61, %cst_23 [1] : vector<8x8xf32> to vector<8xf32>
    %63 = vector.shape_cast %62 : vector<8xf32> to vector<8x1xf32>
    %cst_24 = arith.constant dense<0.000000e+00> : vector<8x8xf32>
    %64 = tpu.matmul %61, %55, %cst_24 {dimension_numbers = #tpu.dot_dimension_numbers<[1], [0], [0], [1], [0, 0, 1, 1], [], []>} : vector<8x8xf32>, vector<8x8xf32>, vector<8x8xf32> -> vector<8x8xf32>
    %65 = tpu.reciprocal %63 {approx = true} : vector<8x1xf32> -> vector<8x1xf32>
    %66 = vector.broadcast %65 : vector<8x1xf32> to vector<8x8xf32>
    %67 = arith.mulf %64, %66 : vector<8x8xf32>
    %68 = vector.extract_strided_slice %16 {offsets = [0, 24], sizes = [8, 8], strides = [1, 1]} : vector<8x32xf32> to vector<8x8xf32>
    %69 = vector.extract_strided_slice %19 {offsets = [0, 24], sizes = [8, 8], strides = [1, 1]} : vector<8x32xf32> to vector<8x8xf32>
    %70 = vector.extract_strided_slice %22 {offsets = [0, 24], sizes = [8, 8], strides = [1, 1]} : vector<8x32xf32> to vector<8x8xf32>
    %cst_25 = arith.constant dense<0.000000e+00> : vector<8x8xf32>
    %71 = tpu.matmul %68, %69, %cst_25 {dimension_numbers = #tpu.dot_dimension_numbers<[1], [1], [0], [0], [0, 0, 1, 0], [], []>} : vector<8x8xf32>, vector<8x8xf32>, vector<8x8xf32> -> vector<8x8xf32>
    %cst_26 = arith.constant dense<0xFF800000> : vector<8xf32>
    %72 = vector.multi_reduction <maximumf>, %71, %cst_26 [1] : vector<8x8xf32> to vector<8xf32>
    %73 = vector.shape_cast %72 : vector<8xf32> to vector<8x1xf32>
    %74 = vector.broadcast %73 : vector<8x1xf32> to vector<8x8xf32>
    %75 = arith.subf %71, %74 : vector<8x8xf32>
    %76 = math.exp %75 : vector<8x8xf32>
    %cst_27 = arith.constant dense<0.000000e+00> : vector<8xf32>
    %77 = vector.multi_reduction <add>, %76, %cst_27 [1] : vector<8x8xf32> to vector<8xf32>
    %78 = vector.shape_cast %77 : vector<8xf32> to vector<8x1xf32>
    %cst_28 = arith.constant dense<0.000000e+00> : vector<8x8xf32>
    %79 = tpu.matmul %76, %70, %cst_28 {dimension_numbers = #tpu.dot_dimension_numbers<[1], [0], [0], [1], [0, 0, 1, 1], [], []>} : vector<8x8xf32>, vector<8x8xf32>, vector<8x8xf32> -> vector<8x8xf32>
    %80 = tpu.reciprocal %78 {approx = true} : vector<8x1xf32> -> vector<8x1xf32>
    %81 = vector.broadcast %80 : vector<8x1xf32> to vector<8x8xf32>
    %82 = arith.mulf %79, %81 : vector<8x8xf32>
    %83 = tpu.concatenate %37, %52, %67, %82 in 1 : vector<8x8xf32>, vector<8x8xf32>, vector<8x8xf32>, vector<8x8xf32> -> vector<8x32xf32>
    %84 = arith.index_cast %arg2 : i32 to index
    %c0_29 = arith.constant 0 : index
    %c0_30 = arith.constant 0 : index
    %85 = vector.load %arg10[%84, %c0_29, %c0_30] : memref<1x1x32xf32, #tpu.memory_space<vmem>>, vector<1x1x32xf32>
    %86 = vector.shape_cast %85 : vector<1x1x32xf32> to vector<1x32xf32>
    %87 = vector.broadcast %86 : vector<1x32xf32> to vector<8x32xf32>
    %88 = arith.addf %83, %87 : vector<8x32xf32>
    %c0_31 = arith.constant 0 : index
    %c0_32 = arith.constant 0 : index
    %89 = vector.load %arg14[%c0_31, %c0_32] : memref<8x32xf32, #tpu.memory_space<vmem>>, vector<8x32xf32>
    %90 = arith.index_cast %arg2 : i32 to index
    %c0_33 = arith.constant 0 : index
    %c0_34 = arith.constant 0 : index
    %91 = vector.load %arg11[%90, %c0_33, %c0_34] : memref<1x32x32xf32, #tpu.memory_space<vmem>>, vector<1x32x32xf32>
    %92 = vector.shape_cast %91 : vector<1x32x32xf32> to vector<32x32xf32>
    %cst_35 = arith.constant dense<0.000000e+00> : vector<8x32xf32>
    %93 = tpu.matmul %88, %92, %cst_35 {dimension_numbers = #tpu.dot_dimension_numbers<[1], [0], [0], [1], [0, 0, 1, 1], [], []>} : vector<8x32xf32>, vector<32x32xf32>, vector<8x32xf32> -> vector<8x32xf32>
    %94 = arith.addf %89, %93 : vector<8x32xf32>
    %c0_36 = arith.constant 0 : index
    %c0_37 = arith.constant 0 : index
    %95 = vector.load %arg14[%c0_36, %c0_37] : memref<8x32xf32, #tpu.memory_space<vmem>>, vector<8x32xf32>
    tpu.vector_store %arg14[%c0_36, %c0_37], %94 {strides = array<i32>} : memref<8x32xf32, #tpu.memory_space<vmem>>, vector<8x32xf32>,
    %c0_i32_38 = arith.constant 0 : i32
    %96 = arith.cmpi eq, %arg2, %c0_i32_38 : i32
    %97 = arith.extui %96 : i1 to i32
    %c0_i32_39 = arith.constant 0 : i32
    %98 = arith.cmpi ne, %97, %c0_i32_39 : i32
    scf.if %98 {
      %c0_40 = arith.constant 0 : index
      %c0_41 = arith.constant 0 : index
      %99 = vector.load %arg14[%c0_40, %c0_41] : memref<8x32xf32, #tpu.memory_space<vmem>>, vector<8x32xf32>
      %c0_42 = arith.constant 0 : index
      %c0_43 = arith.constant 0 : index
      %100 = vector.load %arg12[%c0_42, %c0_43] : memref<1x32xf32, #tpu.memory_space<vmem>>, vector<1x32xf32>
      %101 = vector.broadcast %100 : vector<1x32xf32> to vector<8x32xf32>
      %102 = arith.addf %99, %101 : vector<8x32xf32>
      %c0_44 = arith.constant 0 : index
      %c0_45 = arith.constant 0 : index
      %c0_46 = arith.constant 0 : index
      %103 = vector.load %arg13[%c0_44, %c0_45, %c0_46] : memref<1x8x32xf32, #tpu.memory_space<vmem>>, vector<1x8x32xf32>
      %104 = vector.shape_cast %103 : vector<1x8x32xf32> to vector<8x32xf32>
      %105 = vector.shape_cast %102 : vector<8x32xf32> to vector<1x8x32xf32>
      tpu.vector_store %arg13[%c0_44, %c0_45, %c0_46], %105 {strides = array<i32>} : memref<1x8x32xf32, #tpu.memory_space<vmem>>, vector<1x8x32xf32>,
    } else {
    }
    return
  }
  func.func @transform_0(%arg0: i32, %arg1: i32, %arg2: i32) -> (i32, i32, i32) {
    %c0_i32 = arith.constant 0 : i32
    %c0_i32_0 = arith.constant 0 : i32
    return %arg0, %arg1, %c0_i32 : i32, i32, i32
  }
  func.func @transform_1(%arg0: i32, %arg1: i32, %arg2: i32) -> (i32, i32, i32) {
    %c0_i32 = arith.constant 0 : i32
    %c0_i32_0 = arith.constant 0 : i32
    %c0_i32_1 = arith.constant 0 : i32
    return %arg0, %c0_i32, %c0_i32_0 : i32, i32, i32
  }
  func.func @transform_2(%arg0: i32, %arg1: i32, %arg2: i32) -> (i32, i32, i32) {
    %c0_i32 = arith.constant 0 : i32
    %c0_i32_0 = arith.constant 0 : i32
    %c0_i32_1 = arith.constant 0 : i32
    %c0_i32_2 = arith.constant 0 : i32
    return %c0_i32, %c0_i32_0, %c0_i32_1 : i32, i32, i32
  }
  func.func @transform_3(%arg0: i32, %arg1: i32, %arg2: i32) -> (i32, i32, i32) {
    %c0_i32 = arith.constant 0 : i32
    %c0_i32_0 = arith.constant 0 : i32
    %c0_i32_1 = arith.constant 0 : i32
    %c0_i32_2 = arith.constant 0 : i32
    return %c0_i32, %c0_i32_0, %c0_i32_1 : i32, i32, i32
  }
  func.func @transform_4(%arg0: i32, %arg1: i32, %arg2: i32) -> (i32, i32, i32) {
    %c0_i32 = arith.constant 0 : i32
    %c0_i32_0 = arith.constant 0 : i32
    %c0_i32_1 = arith.constant 0 : i32
    %c0_i32_2 = arith.constant 0 : i32
    return %c0_i32, %c0_i32_0, %c0_i32_1 : i32, i32, i32
  }
  func.func @transform_5(%arg0: i32, %arg1: i32, %arg2: i32) -> (i32, i32, i32) {
    %c0_i32 = arith.constant 0 : i32
    %c0_i32_0 = arith.constant 0 : i32
    %c0_i32_1 = arith.constant 0 : i32
    %c0_i32_2 = arith.constant 0 : i32
    return %c0_i32, %c0_i32_0, %c0_i32_1 : i32, i32, i32
  }
  func.func @transform_6(%arg0: i32, %arg1: i32, %arg2: i32) -> (i32, i32, i32) {
    %c0_i32 = arith.constant 0 : i32
    %c0_i32_0 = arith.constant 0 : i32
    %c0_i32_1 = arith.constant 0 : i32
    %c0_i32_2 = arith.constant 0 : i32
    return %c0_i32, %c0_i32_0, %c0_i32_1 : i32, i32, i32
  }
  func.func @transform_7(%arg0: i32, %arg1: i32, %arg2: i32) -> (i32, i32, i32) {
    %c0_i32 = arith.constant 0 : i32
    %c0_i32_0 = arith.constant 0 : i32
    %c0_i32_1 = arith.constant 0 : i32
    %c0_i32_2 = arith.constant 0 : i32
    return %c0_i32, %c0_i32_0, %c0_i32_1 : i32, i32, i32
  }
  func.func @transform_8(%arg0: i32, %arg1: i32, %arg2: i32) -> (i32, i32, i32) {
    %c0_i32 = arith.constant 0 : i32
    %c0_i32_0 = arith.constant 0 : i32
    %c0_i32_1 = arith.constant 0 : i32
    %c0_i32_2 = arith.constant 0 : i32
    return %c0_i32, %c0_i32_0, %c0_i32_1 : i32, i32, i32
  }
  func.func @transform_9(%arg0: i32, %arg1: i32, %arg2: i32) -> (i32, i32) {
    %c0_i32 = arith.constant 0 : i32
    %c0_i32_0 = arith.constant 0 : i32
    %c0_i32_1 = arith.constant 0 : i32
    return %c0_i32, %c0_i32_0 : i32, i32
  }
  func.func @transform_10(%arg0: i32, %arg1: i32, %arg2: i32) -> (i32, i32, i32) {
    %c0_i32 = arith.constant 0 : i32
    %c0_i32_0 = arith.constant 0 : i32
    return %arg0, %arg1, %c0_i32 : i32, i32, i32
  }
}

</mosaic_0001>

<bundles_post_ra>
// kernel: tpu_custom_call.1
= control target key start
LH: loop header
LB: loop body
LE: loop exit
PB: predicated region body
PF: predicated region fallthrough
CT: control target
= control target key end

     0   :  { %s1886_s0 = inlined_call_operand.hbm [shape: f32[2,8,32], index: 0, kind: input, shape index: {}]   ;;  %s1887_s1 = inlined_call_operand.hbm [shape: f32[2,8,32], index: 1, kind: input, shape index: {}]   ;;  %s1888_s2 = inlined_call_operand.hbm [shape: f32[1,32,32], index: 2, kind: input, shape index: {}]   ;;  %s1889_s3 = inlined_call_operand.vmem [shape: f32[1,1,32], index: 3, kind: input, shape index: {}]   ;;  %s1890_s4 = inlined_call_operand.hbm [shape: f32[1,32,32], index: 4, kind: input, shape index: {}]   ;;  %s1891_s5 = inlined_call_operand.vmem [shape: f32[1,1,32], index: 5, kind: input, shape index: {}]   ;;  %s1892_s6 = inlined_call_operand.hbm [shape: f32[1,32,32], index: 6, kind: input, shape index: {}]   ;;  %s1893_s7 = inlined_call_operand.vmem [shape: f32[1,1,32], index: 7, kind: input, shape index: {}]   ;;  %s1894_s8 = inlined_call_operand.hbm [shape: f32[1,32,32], index: 8, kind: input, shape index: {}]   ;;  %s1895_s9 = inlined_call_operand.vmem [shape: f32[1,32], index: 9, kind: input, shape index: {}]   ;;  %s1896_s10 = inlined_call_operand.hbm [shape: f32[2,8,32], index: 10, kind: output, shape index: {}]  }
   0x1   :  { %1902 = sst [smem:[#allocation29_spill]] %s1888_s2 }
   0x2   :  { %1903 = sst [smem:[#allocation30_spill]] %s1890_s4 }
   0x3   :  { %1904 = sst [smem:[#allocation31_spill]] %s1892_s6 }
   0x4   :  { %1905 = sst [smem:[#allocation32_spill]] %s1894_s8 }
   0x5   :  { %1906 = sst [smem:[#allocation33_spill]] %s1895_s9 }
   0x6   :  { %15 = vsyncpa [#allocation6], 0 }
   0x7   :  { %17 = vsyncpa [#allocation6 + $0x1], 0 }
   0x8   :  { %18 = vsyncpa [#allocation9], 0 }
   0x9   :  { %20 = vsyncpa [#allocation9 + $0x1], 0 }
   0xa   :  { %21 = vsyncpa [#allocation12], 0 }
   0xb   :  { %22 = vsyncpa [#allocation15], 0 }
   0xc   :  { %23 = vsyncpa [#allocation7], 0 }
   0xd   :  { %25 = vsyncpa [#allocation7 + $0x1], 0  ;;  %s1649_s13 = smov 0   ;;  %s1651_s14 = smov 0  }
   0xe   :  { %s1653_s15 = smov 0   ;;  %s1655_s16 = smov 0  }
   0xf   :  { %s1657_s17 = smov 0   ;;  %s1659_s18 = smov 0  }
  0x10 LB: > { %1907 = sst [smem:[#allocation23_spill]] %s1559_s13  ;;  %s1680_s19 = sadd.s32 4294967295, %s1579_s18   ;;  %s1579_s18 = sphi %s1659_s18, %s31_s18   ;;  %s1575_s17 = sphi %s1657_s17, %s1929_s17   ;;  %s1571_s16 = sphi %s1655_s16, %s1928_s16   ;;  %s1567_s15 = sphi %s1653_s15, %s1927_s15   ;;  %s1563_s14 = sphi %s1651_s14, %s1931_s14   ;;  %s1559_s13 = sphi %s1649_s13, %s1930_s13  }
  0x11   : > { %1908 = sst [smem:[#allocation24_spill]] %s1567_s15  ;;  %p1126_p0 = scmp.ge.s32.totalorder %s1579_s18, 1 }
  0x12   : > { %1909 = sst [smem:[#allocation25_spill]] %s1575_s17  ;;  %p73_p1 = scmp.eq.s32.totalorder %s1680_s19, 0 }
  0x13   : > { %p305_p2 = scmp.lt.s32.totalorder %s1579_s18, 3  ;;  %s1910_s2 = sld [smem:[#allocation29_spill]] }
  0x14   : > { %s1581_s24 = smov [#allocation10]   ;;  %p1131_p6 = scmp.ge.s32.totalorder %s1579_s18, 2 }
  0x15   : > { %p1688_p3 = pnand %p1126_p0, %p305_p2  ;;  %s318_s25 = sshll.u32 %s1581_s24, 4  ;;  %s319_s25 = int_to_ptr.vmem [resolvable:$true] %s318_s25 }
  0x16   : > { %s1913_s4 = sld [smem:[#allocation30_spill]]  ;;  %s1582_s30 = smov 128  }
  0x17   : > { %p1186_p4 = pneg %p1688_p3  ;;  %s1583_s11 = smov 8  }
  0x18   : > { %s1584_s12 = smov [#allocation11]   ;;  %s1914_s6 = sld [smem:[#allocation31_spill]] }
  0x19   : > { %s316_s22 = sshll.u32 %s1910_s2, 4  ;;  %p1696_p5 = pnand %p1186_p4, %p73_p1  ;;  %s317_s22 = int_to_ptr.hbm [resolvable:$true] %s316_s22 }
  0x1a   : > { %s335_s20 = sshll.u32 %s1584_s12, 4  ;;  %s1915_s8 = sld [smem:[#allocation32_spill]]  ;;  %s336_s20 = int_to_ptr.vmem [resolvable:$true] %s335_s20 }
  0x1b   : > { %1189 = dma.hbm_to_vmem [thread:$0]  (!%p1696_p5), %s317_s22, 512, %s319_s25, [#allocation9], %s1582_s30, %s1582_s30, %s1583_s11  }
  0x1c   : > { %s333_s29 = sshll.u32 %s1913_s4, 4  ;;  %s1585_s25 = smov [#allocation13]   ;;  %s334_s29 = int_to_ptr.hbm [resolvable:$true] %s333_s29 }
  0x1d   : > { %1192 = dma.hbm_to_vmem [thread:$0]  (!%p1696_p5), %s334_s29, 512, %s336_s20, [#allocation12], %s1582_s30, %s1582_s30, %s1583_s11  }
  0x1e   : > { %s350_s2 = sshll.u32 %s1914_s6, 4  ;;  %s352_s4 = sshll.u32 %s1585_s25, 4  ;;  %s351_s2 = int_to_ptr.hbm [resolvable:$true] %s350_s2  ;;  %s353_s4 = int_to_ptr.vmem [resolvable:$true] %s352_s4 }
  0x1f   : > { %1195 = dma.hbm_to_vmem [thread:$0]  (!%p1696_p5), %s351_s2, 512, %s353_s4, [#allocation12], %s1582_s30, %s1582_s30, %s1583_s11  }
  0x20   : > { %s367_s22 = sshll.u32 %s1915_s8, 4  ;;  %s1586_s12 = smov [#allocation14]   ;;  %s368_s22 = int_to_ptr.hbm [resolvable:$true] %s367_s22 }
  0x21   : > { %s369_s21 = sshll.u32 %s1586_s12, 4  ;;  %s1125_s29 = sadd.s32 4294967294, %s1579_s18   ;;  %s370_s21 = int_to_ptr.vmem [resolvable:$true] %s369_s21 }
  0x22   : > { %1198 = dma.hbm_to_vmem [thread:$0]  (!%p1696_p5), %s368_s22, 512, %s370_s21, [#allocation15], %s1582_s30, %s1582_s30, %s1583_s11  }
  0x23   : > { %s50_s20 = sadd.s32 1, %s1575_s17  ;;  %s59_s24 = sadd.s32 1, %s1567_s15 }
  0x24   : > { %p52_p7 = scmp.ge.s32.totalorder %s50_s20, 2  ;;  %p66_p8 = scmp.ne.s32.totalorder %s1567_s15, %s1563_s14 }
  0x25   : > { %p67_p9 = scmp.eq.s32.totalorder %s1579_s18, 0  ;;  %p72_p11 = scmp.ne.s32.totalorder %s1563_s14, %s1559_s13 }
  0x26   : > { %s1933_s20 = smov (%p52_p7, %s50_s20), 0  ;;  %p292_p12 = scmp.eq.s32.totalorder %s1680_s19, 1 }
  0x27   : > { %1916 = sst [smem:[#allocation26_spill]] %s1933_s20  ;;  %p1726_p10 = por %p67_p9, %p66_p8 }
  0x28   : > { %s54_s4 = ssub.s32 %s1575_s17, %s1933_s20  ;;  %p1737_p0 = por %p73_p1, %p72_p11 }
  0x29   : > { %p57_p13 = scmp.eq.s32.totalorder %s54_s4, 0  ;;  %p1741_p2 = por %p292_p12, %p66_p8 }
  0x2a   : > { %p298_p4 = scmp.eq.s32.totalorder %s1125_s29, 1  ;;  %p1214_p7 = scmp.lt.s32.totalorder %s1579_s18, 2 }
  0x2b   : > { %s1746_s11 = scalar_select %p57_p13, %s1567_s15, %s59_s24  }
  0x2c   : > { %p1748_p5 = por %p298_p4, %p72_p11  ;;  %s386_s28 = sand.u32 1, %s1567_s15  }
  0x2d   : > { %1920 = sst [smem:[#allocation27_spill]] %s1746_s11  ;;  %s1133_s22 = sshll.u32 %s1575_s17, 3 }
  0x2e   : > { %s1921_s27 = scalar_select %p1748_p5, 1, 0 }
  0x2f   : > { %s1132_s25 = sshll.u32 %s386_s28, 3  ;;  %s395_s4 = scalar_lea.hbm %s1886_s0, %s1133_s22 }
  0x30   : > { %1922 = sst [smem:[#allocation28_spill]] %s1921_s27  ;;  %s397_s6 = sshll.u32 %s395_s4, 4  ;;  %s398_s6 = int_to_ptr.hbm [resolvable:$true] %s397_s6 }
  0x31   : > { %s390_s8 = scalar_lea.vmem [#allocation5], %s1132_s25  ;;  %p1200_p8 = pnand %p1214_p7, %p1726_p10 }
  0x32   : > { %s399_s20 = sshll.u32 %s390_s8, 4  ;;  %s414_s11 = scalar_lea.hbm %s1887_s1, %s1133_s22  ;;  %s400_s20 = int_to_ptr.vmem [resolvable:$true] %s399_s20 }
  0x33   : > { %s406_s27 = sand.u32 1, %s1579_s18   ;;  %s387_s13 = scalar_lea.sflag [#allocation6], %s386_s28 }
  0x34   : > { %1202 = dma.hbm_to_vmem [thread:$0]  (!%p1200_p8), %s398_s6, 128, %s400_s20, %s387_s13  }
  0x35   : > { %s416_s17 = sshll.u32 %s414_s11, 4  ;;  %s410_s15 = scalar_lea.vmem [#allocation8], %s1132_s25  ;;  %s417_s17 = int_to_ptr.hbm [resolvable:$true] %s416_s17 }
  0x36   : > { %s418_s9 = sshll.u32 %s410_s15, 4  ;;  %s407_s12 = scalar_lea.sflag [#allocation9], %s406_s27  ;;  %s419_s9 = int_to_ptr.vmem [resolvable:$true] %s418_s9 }
  0x37   : > { %1205 = dma.hbm_to_vmem [thread:$0]  (!%p1200_p8), %s417_s17, 128, %s419_s9, %s407_s12  }
  0x38   : > { %427 = sbr.rel (%p1688_p3) target bundleno = 1006 (0x3ee), region = 60  ;;  %s1767_s8 = sand.u32 (!%p1688_p3), 1, %s1563_s14  }
  0x39   : > { %s1770_s2 = sshll.u32 (!%p1688_p3), %s1767_s8, 3  ;;  %s430_s6 = scalar_lea.sflag (!%p1688_p3), [#allocation6], %s1767_s8 }
  0x3a   : > { %s433_s13 = scalar_lea.vmem (!%p1688_p3), [#allocation5], %s1770_s2 }
  0x3d   : > { %1534 = dma.done.wait (%p1737_p0), %s430_s6, 128  }
  0x3e   : > { %1536 = vsyncadd (%p1737_p0), %s430_s6, 4294967168  ;;  %s439_s9 = sand.u32 1, %s1680_s19   ;;  %s443_s17 = scalar_lea.vmem [#allocation8], %s1770_s2 }
  0x3f   : > { %s440_s15 = scalar_lea.sflag [#allocation9], %s439_s9 }
  0x40   : > { %1538 = dma.done.wait (%p1737_p0), %s440_s15, 128  }
  0x41   : > { %1540 = vsyncadd (%p1737_p0), %s440_s15, 4294967168 }
  0x42   : > { %1542 = dma.done.wait (%p73_p1), [#allocation9], 512  }
  0x43   : > { %1544 = vsyncadd (%p73_p1), [#allocation9], 4294966784 }
  0x44   : > { %1546 = dma.done.wait (%p73_p1), [#allocation12], 1024  }
  0x45   : > { %1548 = vsyncadd (%p73_p1), [#allocation12], 4294966272 }
  0x46   : > { %1550 = dma.done.wait (%p73_p1), [#allocation15], 512  }
  0x47   : > { %1552 = vsyncadd (%p73_p1), [#allocation15], 4294966784  ;;  %v522_v0 = vld [vmem:[#allocation11 + $0x18] sm:$0xff]  ;;  %v521_v1 = vld [vmem:[#allocation11 + $0x10] sm:$0xff]  ;;  %vm510_vm0 = vcmask 261120   ;;  %vm623_vm1 = vcmask 64512  }
  0x48   : > { %544 = vmatpush.msra.mxu0 %v522_v0  ;;  %v588_v2 = vld [vmem:[#allocation10 + $0x18] sm:$0xff]  ;;  %v520_v3 = vld [vmem:[#allocation11 + $0x8] sm:$0xff]  ;;  %v587_v4 = vld [vmem:[#allocation10 + $0x10] sm:$0xff]  ;;  %s1587_s11 = smov 104   ;;  %s1588_s27 = smov 120   ;;  %vm893_vm2 = vcmask 130048  }
  0x49   : > { %610 = vmatpush.msra.mxu2 %v588_v2  ;;  %v519_v5 = vld [vmem:[#allocation11] sm:$0xff]  ;;  %v586_v6 = vld [vmem:[#allocation10 + $0x8] sm:$0xff]  ;;  %v516_v7 = vld [vmem:[%s443_s17] sm:$0xff]  ;;  %s1589_s28 = smov 112   ;;  %s1590_s22 = smov 8   ;;  %vm895_vm3 = vcmask 195584  }
  0x4a   : > { %545 = vmatpush.msra.mxu0 %v521_v1  ;;  %v585_v8 = vld [vmem:[#allocation10] sm:$0xff]  ;;  %v1281_v10 = vld [vmem:[%s1891_s5] ss:$0 sm:$0xff]  ;;  %v556_v17 = vld [vmem:[#allocation13 + $0x18] sm:$0xff]  ;;  %s1591_s25 = smov 24   ;;  %s1592_s21 = smov 16  }
  0x4b   : > { %611 = vmatpush.msra.mxu2 %v587_v4  ;;  %v582_v9 = vld [vmem:[%s433_s13] sm:$0xff]  ;;  %v555_v18 = vld [vmem:[#allocation13 + $0x10] sm:$0xff]  ;;  %569 = vmatpush.msra.mxu1 %v556_v17  ;;  %s1161_s24 = sshll.u32 %s1571_s16, 3  ;;  %s1923_s17 = sld [smem:[#allocation33_spill]] }
  0x4c   : > { %546 = vmatpush.msra.mxu0 %v520_v3  ;;  %v1282_v13 = vld [vmem:[%s1889_s3] ss:$0 sm:$0xff]  ;;  %v553_v20 = vld [vmem:[#allocation13] sm:$0xff]  ;;  %s956_s13 = scalar_lea.hbm %s1896_s10, %s1161_s24  ;;  %s505_s19 = scalar_lea.vmem [#allocation16], %s1770_s2 }
  0x4d   : > { %612 = vmatpush.msra.mxu2 %v586_v6  ;;  %570 = vmatpush.msra.mxu1 %v555_v18  ;;  %v554_v19 = vld [vmem:[#allocation13 + $0x8] sm:$0xff]  ;;  %s958_s23 = sshll.u32 %s505_s19, 4  ;;  %s960_s20 = sshll.u32 %s956_s13, 4  ;;  %s959_s23 = int_to_ptr.vmem [resolvable:$true] %s958_s23  ;;  %s961_s20 = int_to_ptr.hbm [resolvable:$true] %s960_s20 }
  0x4e   : > { %547 = vmatpush.msra.mxu0 %v519_v5  ;;  %v1283_v18 = vld [vmem:[%s1893_s7] ss:$0 sm:$0xff]  ;;  %s945_s16 = scalar_lea.sflag [#allocation7], %s1767_s8  ;;  %s1495_s26 = sshra.s32 %s961_s20, 4  ;;  %s1496_s26 = int_to_ptr.hbm [resolvable:$true] %s1495_s26 }
  0x4f   : > { %1144 = vmatmul.msk.f32.vlgmr.msra.gmra.mxu0 %vm510_vm0, %v516_v7  ;;  %613 = vmatpush.msra.mxu2 %v585_v8  ;;  %s1501_s2 = scalar_lea.hbm %s1896_s10, 16  ;;  %p1502_p10 = scmp.lt.s32.totalorder %s1496_s26, %s1896_s10 }
  0x50   : > { %1146 = vmatmul.msk.f32.vlgmr.msra.gmra.mxu2 %vm510_vm0, %v582_v9  ;;  %571 = vmatpush.msra.mxu1 %v554_v19  ;;  %v908_v9 = vld [vmem:[#allocation14 + $0x18] sm:$0xff] }
  0x52   : > { %572 = vmatpush.msra.mxu1 %v553_v20 }
  0x53   : > { %1145 = vmatmul.msk.f32.vlgmr.msra.gmra.mxu1 %vm510_vm0, %v516_v7 }
  0xcc   : > { %v549_v11 = vpop.f32.mrf.mxu0 }
  0xcd   : > { %v550_v12 = vadd.f32 %v1281_v10, %v549_v11  ;;  %v907_v10 = vld [vmem:[#allocation14 + $0x10] sm:$0xff]  ;;  %v906_v11 = vld [vmem:[#allocation14 + $0x8] sm:$0xff] }
  0xcf   : > { %579 = vst.msk [vmem:[#allocation3] sm:$0xff] %vm510_vm0, %v550_v12  ;;  %v905_v12 = vld [vmem:[#allocation14] sm:$0xff] }
  0xd0   : > { %v574_v29 = vpop.f32.mrf.mxu1 }
  0xd1   : > { %581 = vst.msk [vmem:[#allocation4] sm:$0xff] %vm510_vm0, %v574_v29 }
  0xd3   : > { %v615_v14 = vpop.f32.mrf.mxu2 }
  0xd4   : > { %v616_v16 = vadd.f32 %v1282_v13, %v615_v14  ;;  %v1593_v13 = vmov 0.0  }
  0xd5   : > { %511 = vst.msk [vmem:[#allocation2] sm:$0xff] %vm510_vm0, %v1593_v13 }
  0xd6   : > { %v620_v15 = vld [vmem:[#allocation3] sm:$0xff] }
  0xd7   : > { %817 = vrot.lane.b32.xlu2 %v620_v15, %s1587_s11  ;;  %686 = vrot.lane.b32.xlu1 %v620_v15, %s1588_s27 }
  0xd8   : > { %752 = vrot.lane.b32.xlu0 %v620_v15, %s1589_s28  ;;  %1147 = vmatpush.xpose.msk.msra.mxu3 %vm623_vm1, %v620_v15  ;;  %v622_v30 = vld [vmem:[#allocation4] sm:$0xff] }
  0xdb   : > { %1148 = vmatmul.msk.f32.vlgmr.msra.gmra.mxu3 %vm623_vm1, %v616_v16 }
  0xdc   : > { %677 = vmatpush.msrb.mxu3 %v622_v30 }
  0xdf   : > { %815 = vrot.lane.b32.xlu2 %v616_v16, %s1587_s11  ;;  %684 = vrot.lane.b32.xlu1 %v616_v16, %s1588_s27 }
  0xe0   : > { %750 = vrot.lane.b32.xlu0 %v616_v16, %s1589_s28 }
 0x131   : > { %v818_v22 = vpop.permute.xlu2 %817 }
 0x139   : > { %v816_v26 = vpop.permute.xlu2 %815 }
 0x149   : > { %v687_v21 = vpop.permute.xlu1 %686 }
 0x14a   : > { %v753_v23 = vpop.permute.xlu0 %752  ;;  %1150 = vmatpush.xpose.msk.msrb.mxu0 %vm623_vm1, %v687_v21 }
 0x14b   : > { %1153 = vmatpush.xpose.msk.msrb.mxu2 %vm623_vm1, %v753_v23 }
 0x14e   : > { %1156 = vmatpush.xpose.msk.msra.mxu0 %vm623_vm1, %v818_v22 }
 0x14f   : > { %924 = vmatpush.msra.mxu2 %v908_v9 }
 0x151   : > { %v685_v24 = vpop.permute.xlu1 %684  ;;  %925 = vmatpush.msra.mxu2 %v907_v10 }
 0x152   : > { %v751_v25 = vpop.permute.xlu0 %750  ;;  %1151 = vmatmul.msk.f32.vlgmr.msrb.gmra.mxu0 %vm623_vm1, %v685_v24 }
 0x153   : > { %1154 = vmatmul.msk.f32.vlgmr.msrb.gmra.mxu2 %vm623_vm1, %v751_v25  ;;  %v903_v25 = vld [vmem:[#allocation2] sm:$0xff] }
 0x154   : > { %926 = vmatpush.msra.mxu2 %v906_v11 }
 0x156   : > { %927 = vmatpush.msra.mxu2 %v905_v12 }
 0x15a   : > { %1157 = vmatmul.msk.f32.vlgmr.msra.gmra.mxu0 %vm623_vm1, %v816_v26 }
 0x15e   : > { %v647_v27 = vpop.f32.mrf.mxu3 }
 0x15f   : > { %v650_v28 = vsel %vm623_vm1, %v647_v27, -inf }
 0x160   : > { %651 = vmax.xlane.f32.xlu0 %v650_v28  ;;  %v1284_v28 = vld [vmem:[%s1923_s17] ss:$0 sm:$0xff] }
 0x174   : > { %722 = vrot.lane.b32.xlu0 %v622_v30, %s1588_s27 }
 0x1cf   : > { %v709_v31 = vpop.f32.mrf.mxu0 }
 0x1d0   : > { %v712_v32 = vsel %vm623_vm1, %v709_v31, -inf }
 0x1d1   : > { %713 = vmax.xlane.f32.xlu1 %v712_v32 }
 0x1d3   : > { %v652_v33 = vpop.xlane.xlu0 %651 }
 0x1d4   : > { %v653_v34 = vsub.f32 %v647_v27, %v652_v33 }
 0x1d6   : > { %v654_v35 = vmul.f32 1.442695, %v653_v34  ;;  %v775_v36 = vpop.f32.mrf.mxu2 }
 0x1d7   : > { %v778_v37 = vsel %vm623_vm1, %v775_v36, -inf  ;;  %v840_v38 = vpop.f32.mrf.mxu0 }
 0x1d8   : > { %1285 = vpow2.f32 %v654_v35  ;;  %779 = vmax.xlane.f32.xlu2 %v778_v37  ;;  %v843_v40 = vsel %vm623_vm1, %v840_v38, -inf }
 0x1de   : > { %v1286_v39 = vpop.eup %1285 }
 0x1df   : > { %1149 = vmatmul.msk.f32.vlgmr.msrb.gmra.mxu3 %vm623_vm1, %v1286_v39  ;;  %v656_v55 = vsel %vm623_vm1, %v1286_v39, 0.0 }
 0x1e0   : > { %844 = vmax.xlane.f32.xlu2 %v843_v40 }
 0x1e6   : > { %v723_v41 = vpop.permute.xlu0 %722 }
 0x1e7   : > { %743 = vmatpush.msrb.mxu1 %v723_v41 }
 0x1ea   : > { %787 = vrot.lane.b32.xlu1 %v622_v30, %s1589_s28 }
 0x1f8   : > { %852 = vrot.lane.b32.xlu2 %v622_v30, %s1587_s11  ;;  %s1497_s11 = scalar_lea.hbm %s1496_s26, 8 }
 0x1f9   : > { %p1498_p1 = scmp.ne.s32.totalorder %s1496_s26, %s1497_s11  ;;  %p1503_p11 = scmp.lt.s32.totalorder %s1501_s2, %s1497_s11 }
 0x1fb   : > { %p1499_p3 = pnand %p1498_p1, %p1741_p2  ;;  %p1504_p12 = por %p1503_p11, %p1502_p10 }
 0x1fd   : > { %p1500_p9 = pneg %p1499_p3 }
 0x1ff   : > { %p1505_p13 = pnand %p1504_p12, %p1500_p9 }
 0x244   : > { %v714_v42 = vpop.xlane.xlu1 %713 }
 0x245   : > { %v715_v43 = vsub.f32 %v709_v31, %v714_v42 }
 0x247   : > { %v716_v44 = vmul.f32 1.442695, %v715_v43 }
 0x249   : > { %1287 = vpow2.f32 %v716_v44 }
 0x24b   : > { %v780_v45 = vpop.xlane.xlu2 %779 }
 0x24c   : > { %v781_v46 = vsub.f32 %v775_v36, %v780_v45 }
 0x24e   : > { %v782_v47 = vmul.f32 1.442695, %v781_v46 }
 0x24f   : > { %v1288_v48 = vpop.eup %1287 }
 0x250   : > { %1289 = vpow2.f32 %v782_v47  ;;  %1152 = vmatmul.msk.f32.vlgmr.msrb.gmra.mxu1 %vm623_vm1, %v1288_v48  ;;  %v718_v49 = vsel %vm623_vm1, %v1288_v48, 0.0 }
 0x251   : > { %719 = vadd.xlane.f32.xlu0 %v718_v49 }
 0x253   : > { %v845_v50 = vpop.xlane.xlu2 %844 }
 0x254   : > { %v846_v51 = vsub.f32 %v840_v38, %v845_v50 }
 0x256   : > { %v1290_v52 = vpop.eup %1289  ;;  %v847_v53 = vmul.f32 1.442695, %v846_v51 }
 0x257   : > { %v784_v54 = vsel %vm623_vm1, %v1290_v52, 0.0 }
 0x258   : > { %1291 = vpow2.f32 %v847_v53  ;;  %785 = vadd.xlane.f32.xlu1 %v784_v54 }
 0x259   : > { %657 = vadd.xlane.f32.xlu0 %v656_v55 }
 0x25b   : > { %v853_v56 = vpop.permute.xlu2 %852 }
 0x25c   : > { %873 = vmatpush.msra.mxu1 %v853_v56  ;;  %v788_v57 = vpop.permute.xlu1 %787 }
 0x25d   : > { %808 = vmatpush.msra.mxu3 %v788_v57 }
 0x25e   : > { %v1292_v58 = vpop.eup %1291  ;;  %1155 = vmatmul.msk.f32.vlgmr.msra.gmra.mxu3 %vm623_vm1, %v1290_v52 }
 0x25f   : > { %1158 = vmatmul.msk.f32.vlgmr.msra.gmra.mxu1 %vm623_vm1, %v1292_v58  ;;  %v849_v59 = vsel %vm623_vm1, %v1292_v58, 0.0 }
 0x260   : > { %850 = vadd.xlane.f32.xlu2 %v849_v59 }
 0x262   : > { %v679_v2 = vpop.f32.mrf.mxu3 }
 0x2c4   : > { %v720_v60 = vpop.xlane.xlu0 %719 }
 0x2c5   : > { %1293 = vrcp.f32 %v720_v60 }
 0x2cb   : > { %v1294_v61 = vpop.eup %1293  ;;  %v786_v1 = vpop.xlane.xlu1 %785 }
 0x2cc   : > { %v658_v14 = vpop.xlane.xlu0 %657 }
 0x2cd   : > { %v745_v62 = vpop.f32.mrf.mxu1 }
 0x2ce   : > { %v749_v63 = vmul.f32 %v1294_v61, %v745_v62 }
 0x2d0   : > { %881 = vrot.lane.b32.xlu1 %v749_v63, %s1590_s22 }
 0x2d3   : > { %v851_v0 = vpop.xlane.xlu2 %850 }
 0x2d4   : > { %1295 = vrcp.f32 %v851_v0 }
 0x2d5   : > { %1297 = vrcp.f32 %v786_v1 }
 0x2d6   : > { %1299 = vrcp.f32 %v658_v14 }
 0x2da   : > { %v1296_v3 = vpop.eup %1295 }
 0x2db   : > { %v1298_v6 = vpop.eup %1297 }
 0x2dc   : > { %v875_v4 = vpop.f32.mrf.mxu1  ;;  %v1300_v15 = vpop.eup %1299 }
 0x2dd   : > { %v879_v5 = vmul.f32 %v1296_v3, %v875_v4  ;;  %v683_v17 = vmul.f32 %v1300_v15, %v679_v2 }
 0x2df   : > { %889 = vrot.lane.b32.xlu2 %v879_v5, %s1591_s25 }
 0x2e1   : > { %v810_v7 = vpop.f32.mrf.mxu3 }
 0x2e2   : > { %v814_v8 = vmul.f32 %v1298_v6, %v810_v7 }
 0x2e4   : > { %885 = vrot.lane.b32.xlu0 %v814_v8, %s1592_s21 }
 0x339   : > { %v890_v21 = vpop.permute.xlu2 %889 }
 0x342   : > { %v882_v16 = vpop.permute.xlu1 %881 }
 0x343   : > { %v892_v19 = vsel %vm623_vm1, %v683_v17, %v882_v16 }
 0x356   : > { %v886_v20 = vpop.permute.xlu0 %885 }
 0x357   : > { %v894_v22 = vsel %vm893_vm2, %v892_v19, %v886_v20 }
 0x358   : > { %v896_v23 = vsel %vm895_vm3, %v894_v22, %v890_v21 }
 0x359   : > { %v902_v24 = vadd.f32 %v1283_v18, %v896_v23 }
 0x35b   : > { %1159 = vmatmul.msk.f32.vlgmr.msra.gmra.mxu2 %vm510_vm0, %v902_v24 }
 0x3de   : > { %v929_v26 = vpop.f32.mrf.mxu2 }
 0x3df   : > { %v932_v27 = vadd.f32 %v929_v26, %v903_v25 }
 0x3e1   : > { %933 = vst.msk [vmem:[#allocation2] sm:$0xff] %vm510_vm0, %v932_v27 }
 0x3e8   : > { %v937_v29 = vld [vmem:[#allocation2] sm:$0xff] }
 0x3e9   : > { %v942_v30 = vadd.f32 %v1284_v28, %v937_v29 }
 0x3eb   : > { %943 = vst.msk [vmem:[%s505_s19] sm:$0xff] %vm510_vm0, %v942_v30 }
 0x3ec   : > { %1508 = shalt.err (!%p1505_p13)
}
 0x3ed   : > { %1184 = dma.vmem_to_hbm [thread:$0]  (%p1741_p2), %s959_s23, 128, %s961_s20, %s945_s16  }
 0x3ee PF: > { %s1924_s8 = sld [smem:[#allocation23_spill]]  ;;  %p1207_p0 = pnand %p1131_p6, %p1748_p5 }
 0x3f0   : > { %p1208_p4 = pneg %p1207_p0 }
 0x3f4   : > { %s972_s4 = sand.u32 1, %s1924_s8  }
 0x3f5   : > { %s973_s29 = scalar_lea.sflag [#allocation7], %s972_s4 }
 0x3f6   : > { %1554 = dma.done.wait (%p1208_p4), %s973_s29, 128  }
 0x3f7   : > { %1556 = vsyncadd (%p1208_p4), %s973_s29, 4294967168  ;;  %s31_s18 = sadd.s32 1, %s1579_s18   ;;  %s1926_s24 = sld [smem:[#allocation24_spill]] }
 0x3f8   : > { %p28_p7 = scmp.ge.s32.totalorder %s31_s18, 4   ;;  %s1927_s15 = sld [smem:[#allocation27_spill]] }
 0x3f9   : > { %s1928_s16 = sld [smem:[#allocation25_spill]]  ;;  %s1930_s13 = smov %s1563_s14 }
 0x3fa   : > { %s1929_s17 = sld [smem:[#allocation26_spill]]  ;;  %30 = sbr.rel (!%p28_p7) target bundleno = 16 (0x10), region = 157 }
 0x3fd   : > { %s1931_s14 = smov %s1926_s24 }
 0x3ff   :  { %979 = vsyncpa [#allocation6], 1 }
 0x400   :  { %981 = vsyncpa [#allocation6 + $0x1], 1 }
 0x401   :  { %982 = vsyncpa [#allocation9], 1 }
 0x402   :  { %984 = vsyncpa [#allocation9 + $0x1], 1 }
 0x403   :  { %985 = vsyncpa [#allocation12], 1 }
 0x404   :  { %986 = vsyncpa [#allocation15], 1 }
 0x405   :  { %987 = vsyncpa [#allocation7], 1 }
 0x406   :  { %989 = vsyncpa [#allocation7 + $0x1], 1 }

</bundles_post_ra>
